<compile_context>
chip_gen: v6e
topology: v6e:2x2x1
jax: 0.10.0
libtpu: 0.0.40
codegen_flags: <defaults>
</compile_context>

<pallas_src>
import functools
import math

import jax
import jax.numpy as jnp
from jax.experimental import pallas as pl
from jax.experimental.pallas import tpu as pltpu

_LANE = 128
_SUBLANE = 8
_N_STATS = 8
_EPS = 1e-6

_TARGET_TILE_BYTES = 10 * 1024 * 1024   # estimated per-step VMEM working set
_VMEM_LIMIT_BYTES = 32 * 1024 * 1024    # >= scoped default on v5e/v6e/v7x
_MAX_TILE_LANES = 128 * 1024
_N_SPLIT = 2                            # split the reduction axis across cores


def _cdiv(a, b):
    return -(-a // b)


# ---------------------------------------------------------------------------
# Tiling plan: pick a lane-tile size from a VMEM byte budget, pad N up to a
# multiple of (tile * n_split) and return (tile_lanes, tiles_per_split,
# n_split, padded_lanes).
# ---------------------------------------------------------------------------
def _plan_tiles(n_lanes, per_lane_bytes, want_split=_N_SPLIT):
    units = _cdiv(int(n_lanes), _LANE)
    split = want_split if units >= want_split else 1
    target_lanes = min(_MAX_TILE_LANES,
                       max(_LANE, _TARGET_TILE_BYTES // max(1, per_lane_bytes)))
    target_units = max(1, target_lanes // _LANE)
    n_tiles = max(split, _cdiv(units, target_units))
    n_tiles = _cdiv(n_tiles, split) * split
    tile_units = _cdiv(units, n_tiles)
    n_tiles = _cdiv(units, tile_units)
    n_tiles = _cdiv(n_tiles, split) * split
    tile_lanes = tile_units * _LANE
    padded = tile_lanes * n_tiles
    return tile_lanes, n_tiles // split, split, padded


def _per_lane_bytes_multiclass(c, x_itemsize):
    # 2x double-buffered inputs (logits + int32 labels) + ~9 live (C, T) f32
    # temporaries + a handful of (1, T) f32 vectors.
    return 2 * (c * x_itemsize + 4) + 9 * c * 4 + 8 * 4


def _per_lane_bytes_binary(x_itemsize, t_itemsize):
    # 8 packed sublane rows per lane.
    return _SUBLANE * (2 * (x_itemsize + t_itemsize) + 9 * 4) + 8 * 4


# ---------------------------------------------------------------------------
# Kernels
# ---------------------------------------------------------------------------
def _multiclass_kernel(x_ref, lbl_ref, stats_ref, *, n_valid, tile_lanes,
                       tiles_per_split, needs_mask):
    k = pl.program_id(2)

    @pl.when(k == 0)
    def _():
        stats_ref[...] = jnp.zeros_like(stats_ref)

    x = x_ref[0].astype(jnp.float32)                          # (C, T)
    labels = lbl_ref[0]                                       # (1, T) int32
    c_rows, t_lanes = x.shape

    cls = jax.lax.broadcasted_iota(jnp.int32, (c_rows, t_lanes), 0)
    t = (cls == labels).astype(jnp.float32)                   # one-hot (C, T)
                                                              # (all-zero on
                                                              # sentinel labels)

    # Softmax over the class (sublane) axis; one reciprocal per lane instead
    # of a per-element divide.
    m = jnp.max(x, axis=0, keepdims=True)                     # (1, T)
    e = jnp.exp(x - m)                                        # (C, T)
    z = jnp.sum(e, axis=0, keepdims=True)                     # (1, T)
    p = e * pl.reciprocal(z, approx=False)                    # (C, T)

    if needs_mask:
        s = pl.program_id(1)
        lane = jax.lax.broadcasted_iota(jnp.int32, (1, t_lanes), 1)
        g = (s * tiles_per_split + k) * tile_lanes + lane
        w = (g < n_valid).astype(jnp.float32)                 # (1, T) lane mask
        p = p * w                                             # zero p on pads
    else:
        w = 1.0

    pt = p * t                                                # (C, T)
    inter = jnp.sum(pt, axis=1, keepdims=True)                # (C, 1)
    sum_p = jnp.sum(p, axis=1, keepdims=True)
    sum_t = jnp.sum(t, axis=1, keepdims=True)
    cnt_gt = jnp.sum((p > 0.5).astype(jnp.float32), axis=1, keepdims=True)

    # WBCE positive term: for one-hot t, sum_c t_c*log(p_c + eps) per pixel is
    # exactly log(sum_c t_c*p_c + eps)  ->  one log per pixel instead of C.
    p_lab = jnp.sum(pt, axis=0, keepdims=True)                # (1, T)
    pos_lane = jnp.log(p_lab + _EPS)                          # (1, T)
    pos_col = jnp.sum(t * pos_lane, axis=1, keepdims=True)    # (C, 1), exact,
                                                              # pad-safe (t==0)

    # WBCE negative term; (w - t) is zero on padded lanes.
    log_np = jnp.log(1.0 - p + _EPS)                          # (C, T)
    neg_col = jnp.sum((w - t) * log_np, axis=1, keepdims=True)

    zeros_col = jnp.zeros((c_rows, 1), jnp.float32)
    stacked = jnp.concatenate(
        [inter, sum_p, sum_t, cnt_gt, pos_col, neg_col, zeros_col, zeros_col],
        axis=1)                                               # (C, 8)
    stats_ref[0] += stacked


def _binary_kernel(x_ref, t_ref, stats_ref, *, n_valid, row_stride, tile_lanes,
                   tiles_per_split, needs_mask):
    k = pl.program_id(2)

    @pl.when(k == 0)
    def _():
        stats_ref[...] = jnp.zeros_like(stats_ref)

    x = x_ref[0].astype(jnp.float32)                          # (8, T)
    t = t_ref[0].astype(jnp.float32)                          # (8, T)
    p = jax.nn.sigmoid(x)

    if needs_mask:
        s = pl.program_id(1)
        rows = jax.lax.broadcasted_iota(jnp.int32, x.shape, 0)
        cols = jax.lax.broadcasted_iota(jnp.int32, x.shape, 1)
        g = rows * row_stride + (s * tiles_per_split + k) * tile_lanes + cols
        w = (g < n_valid).astype(jnp.float32)                 # (8, T)
        p = p * w
        t = t * w
    else:
        w = 1.0

    def rsum(v):  # full reduction -> (1, 1)
        return jnp.sum(jnp.sum(v, axis=1, keepdims=True), axis=0, keepdims=True)

    inter = rsum(p * t)
    sum_p = rsum(p)
    sum_t = rsum(t)
    cnt_gt = rsum((p > 0.5).astype(jnp.float32))
    pos = rsum(t * jnp.log(p + _EPS))
    neg = rsum((w - t) * jnp.log(1.0 - p + _EPS))
    l1 = rsum(jnp.abs(p - t))     # keep: binary targets may be soft floats
    pad = jnp.zeros((1, 1), jnp.float32)

    stacked = jnp.concatenate([inter, sum_p, sum_t, cnt_gt, pos, neg, l1, pad],
                              axis=1)                          # (1, 8)
    stats_ref[0] += stacked


# ---------------------------------------------------------------------------
# pallas_call wrappers
# ---------------------------------------------------------------------------
def _run_multiclass(x_bcn, lbl_b1n, *, n_valid, tile_lanes, tiles_per_split,
                    n_split, needs_mask):
    B, C, _ = x_bcn.shape
    K, S = tiles_per_split, n_split
    kernel = functools.partial(
        _multiclass_kernel, n_valid=n_valid, tile_lanes=tile_lanes,
        tiles_per_split=K, needs_mask=needs_mask)
    stats = pl.pallas_call(
        kernel,
        out_shape=jax.ShapeDtypeStruct((B * S, C, _N_STATS), jnp.float32),
        grid_spec=pltpu.PrefetchScalarGridSpec(
            num_scalar_prefetch=0,
            grid=(B, S, K),
            in_specs=[
                pl.BlockSpec((1, C, tile_lanes), lambda b, s, k: (b, 0, s * K + k)),
                pl.BlockSpec((1, 1, tile_lanes), lambda b, s, k: (b, 0, s * K + k)),
            ],
            out_specs=pl.BlockSpec((1, C, _N_STATS),
                                   lambda b, s, k: (b * S + s, 0, 0)),
        ),
        compiler_params=pltpu.CompilerParams(
            dimension_semantics=("parallel", "parallel", "arbitrary"),
            vmem_limit_bytes=_VMEM_LIMIT_BYTES),
    )(x_bcn, lbl_b1n)
    return jnp.sum(stats.reshape(B, S, C, _N_STATS), axis=1)   # (B, C, 8)


def _run_binary(x_b8, t_b8, *, n_valid, tile_lanes, tiles_per_split, n_split,
                needs_mask):
    B, R, nlp = x_b8.shape
    K, S = tiles_per_split, n_split
    kernel = functools.partial(
        _binary_kernel, n_valid=n_valid, row_stride=nlp, tile_lanes=tile_lanes,
        tiles_per_split=K, needs_mask=needs_mask)
    stats = pl.pallas_call(
        kernel,
        out_shape=jax.ShapeDtypeStruct((B * S, 1, _N_STATS), jnp.float32),
        grid_spec=pltpu.PrefetchScalarGridSpec(
            num_scalar_prefetch=0,
            grid=(B, S, K),
            in_specs=[
                pl.BlockSpec((1, R, tile_lanes), lambda b, s, k: (b, 0, s * K + k)),
                pl.BlockSpec((1, R, tile_lanes), lambda b, s, k: (b, 0, s * K + k)),
            ],
            out_specs=pl.BlockSpec((1, 1, _N_STATS),
                                   lambda b, s, k: (b * S + s, 0, 0)),
        ),
        compiler_params=pltpu.CompilerParams(
            dimension_semantics=("parallel", "parallel", "arbitrary"),
            vmem_limit_bytes=_VMEM_LIMIT_BYTES),
    )(x_b8, t_b8)
    return jnp.sum(stats.reshape(B, S, 1, _N_STATS), axis=1)   # (B, 1, 8)


# ---------------------------------------------------------------------------
# Public entry: replicates CombinedLoss(n_classes, class_id).forward(x, target)
# ---------------------------------------------------------------------------
def combined_loss(logits, target, *, n_classes, class_id=None):
    del n_classes  # C is taken from the logits; kept for API parity

    if class_id is not None:
        # Binary path: sigmoid on the selected channel, float target.
        x = logits[:, class_id]                               # (B, *spatial)
        B = int(x.shape[0])
        N = int(math.prod(int(d) for d in x.shape[1:]))
        C = 1
        binary = True

        x_flat = x.reshape(B, N)
        t_flat = target.reshape(B, N).astype(jnp.float32)

        per_lane = _per_lane_bytes_binary(x_flat.dtype.itemsize, 4)
        tile_lanes, K, S, nlp = _plan_tiles(_cdiv(N, _SUBLANE), per_lane)
        n_padded = nlp * _SUBLANE
        needs_mask = (n_padded != N)
        if needs_mask:
            pad = n_padded - N
            x_flat = jnp.pad(x_flat, ((0, 0), (0, pad)))
            t_flat = jnp.pad(t_flat, ((0, 0), (0, pad)))
        x_b8 = x_flat.reshape(B, _SUBLANE, nlp)
        t_b8 = t_flat.reshape(B, _SUBLANE, nlp)

        stats = _run_binary(x_b8, t_b8, n_valid=N, tile_lanes=tile_lanes,
                            tiles_per_split=K, n_split=S, needs_mask=needs_mask)
    else:
        # Multi-class path: softmax over channels + one-hot integer labels.
        B = int(logits.shape[0])
        C = int(logits.shape[1])
        N = int(math.prod(int(d) for d in logits.shape[2:]))
        binary = False

        x_bcn = logits.reshape(B, C, N)
        lbl = target.reshape(B, 1, N).astype(jnp.int32)

        per_lane = _per_lane_bytes_multiclass(C, x_bcn.dtype.itemsize)
        tile_lanes, K, S, n_padded = _plan_tiles(N, per_lane)
        needs_mask = (n_padded != N)
        if needs_mask:
            pad = n_padded - N
            x_bcn = jnp.pad(x_bcn, ((0, 0), (0, 0), (0, pad)))
            lbl = jnp.pad(lbl, ((0, 0), (0, 0), (0, pad)), constant_values=C)

        stats = _run_multiclass(x_bcn, lbl, n_valid=N, tile_lanes=tile_lanes,
                                tiles_per_split=K, n_split=S,
                                needs_mask=needs_mask)

    # ------------------ combine the four losses (tiny, plain JAX) -----------
    # SoftDiceLoss
    smooth = 0.01
    inter = stats[..., 0] + smooth                            # (B, C)
    union = stats[..., 1] + stats[..., 2] + smooth
    dice = 1.0 - jnp.sum(2.0 * inter / union) / (float(B) * float(C))

    # VolumeError
    sum_t = jnp.sum(stats[..., 2])
    cnt_gt = jnp.sum(stats[..., 3])
    vol_err = jnp.abs(cnt_gt - sum_t) / (sum_t + 1.0) / 4.0

    # WeightedBinaryCrossEntropyLoss (matches the reference; assumes >=1
    # positive voxel, like the PyTorch code).
    numel = float(B * C * N)
    pos = sum_t
    neg = numel - pos
    ratio = neg / pos
    ratio_one = ratio / (ratio + 1.0)
    ratio_zero = 1.0 / (ratio + 1.0)
    wbce = -2.0 * (ratio_one * jnp.sum(stats[..., 4])
                   + ratio_zero * jnp.sum(stats[..., 5])) / numel

    # L1Loss (mean).  For one-hot targets: sum|p - t| = sum_p + sum_t - 2*inter.
    if binary:
        l1_sum = jnp.sum(stats[..., 6])
    else:
        l1_sum = jnp.sum(stats[..., 1]) + sum_t - 2.0 * jnp.sum(stats[..., 0])
    l1 = l1_sum / numel

    return 0.5 * dice + vol_err + wbce + l1


if __name__ == "__main__":
    key = jax.random.PRNGKey(0)
    B, C, H, W = 2, 4, 16, 16
    k1, k2 = jax.random.split(key)
    logits = jax.random.normal(k1, (B, C, H, W), dtype=jnp.float32)
    target = jax.random.randint(k2, (B, H, W), 0, C, dtype=jnp.int32)

    # Multi-class path (class_id=None -> softmax + one-hot target).
    loss = combined_loss(logits, target, n_classes=C, class_id=None)
    loss = jax.block_until_ready(loss)

    # Binary path (class_id given -> sigmoid on selected channel, 0/1 target).
    bin_target = (target == 1).astype(jnp.float32)
    loss_bin = combined_loss(logits, bin_target, n_classes=C, class_id=1)
    loss_bin = jax.block_until_ready(loss_bin)

    print("KERNEL_OK")
</pallas_src>

<mosaic_0001>
module attributes {stable_mosaic.version = 11 : i64} {
  func.func @_multiclass_kernel(%arg0: i32, %arg1: i32, %arg2: i32, %arg3: memref<1x4x128xf32, #tpu.memory_space<vmem>>, %arg4: memref<1x1x128xi32, #tpu.memory_space<vmem>>, %arg5: memref<1x4x8xf32, #tpu.memory_space<vmem>>) attributes {dimension_semantics = [#tpu.dimension_semantics<parallel>, #tpu.dimension_semantics<parallel>, #tpu.dimension_semantics<arbitrary>], iteration_bounds = array<i64: 2, 2, 1>, scalar_prefetch = 0 : i64, scratch_operands = 0 : i64, tpu.core_type = #tpu.core_type<tc>, window_params = [{transform_indices = @transform_0, window_bounds = array<i64: 1, 4, 128>}, {transform_indices = @transform_1, window_bounds = array<i64: 1, 1, 128>}, {transform_indices = @transform_2, window_bounds = array<i64: 1, 4, 8>}]} {
    %c0_i32 = arith.constant 0 : i32
    %0 = arith.cmpi eq, %arg2, %c0_i32 : i32
    %1 = arith.extui %0 : i1 to i32
    %c0_i32_0 = arith.constant 0 : i32
    %2 = arith.cmpi ne, %1, %c0_i32_0 : i32
    scf.if %2 {
      %cst_26 = arith.constant 0.000000e+00 : f32
      %62 = vector.broadcast %cst_26 : f32 to vector<1x4x8xf32>
      %c0_27 = arith.constant 0 : index
      %c0_28 = arith.constant 0 : index
      %c0_29 = arith.constant 0 : index
      %63 = vector.load %arg5[%c0_27, %c0_28, %c0_29] : memref<1x4x8xf32, #tpu.memory_space<vmem>>, vector<1x4x8xf32>
      tpu.vector_store %arg5[%c0_27, %c0_28, %c0_29], %62 {strides = array<i32>} : memref<1x4x8xf32, #tpu.memory_space<vmem>>, vector<1x4x8xf32>,
    } else {
    }
    %c0 = arith.constant 0 : index
    %c0_1 = arith.constant 0 : index
    %c0_2 = arith.constant 0 : index
    %3 = vector.load %arg3[%c0, %c0_1, %c0_2] : memref<1x4x128xf32, #tpu.memory_space<vmem>>, vector<1x4x128xf32>
    %4 = vector.shape_cast %3 : vector<1x4x128xf32> to vector<4x128xf32>
    %c0_3 = arith.constant 0 : index
    %c0_4 = arith.constant 0 : index
    %c0_5 = arith.constant 0 : index
    %5 = vector.load %arg4[%c0_3, %c0_4, %c0_5] : memref<1x1x128xi32, #tpu.memory_space<vmem>>, vector<1x1x128xi32>
    %6 = vector.shape_cast %5 : vector<1x1x128xi32> to vector<1x128xi32>
    %7 = tpu.iota {dimensions = array<i32: 0>} : vector<4x128xi32>
    %8 = vector.broadcast %6 : vector<1x128xi32> to vector<4x128xi32>
    %9 = arith.cmpi eq, %7, %8 : vector<4x128xi32>
    %10 = arith.extui %9 : vector<4x128xi1> to vector<4x128xi32>
    %11 = arith.sitofp %10 : vector<4x128xi32> to vector<4x128xf32>
    %cst = arith.constant dense<0xFF800000> : vector<128xf32>
    %12 = vector.multi_reduction <maximumf>, %4, %cst [0] : vector<4x128xf32> to vector<128xf32>
    %13 = vector.shape_cast %12 : vector<128xf32> to vector<1x128xf32>
    %14 = vector.broadcast %13 : vector<1x128xf32> to vector<4x128xf32>
    %15 = arith.subf %4, %14 : vector<4x128xf32>
    %16 = math.exp %15 : vector<4x128xf32>
    %cst_6 = arith.constant dense<0.000000e+00> : vector<128xf32>
    %17 = vector.multi_reduction <add>, %16, %cst_6 [0] : vector<4x128xf32> to vector<128xf32>
    %18 = vector.shape_cast %17 : vector<128xf32> to vector<1x128xf32>
    %19 = tpu.reciprocal %18 : vector<1x128xf32> -> vector<1x128xf32>
    %20 = vector.broadcast %19 : vector<1x128xf32> to vector<4x128xf32>
    %21 = arith.mulf %16, %20 : vector<4x128xf32>
    %22 = arith.mulf %21, %11 : vector<4x128xf32>
    %cst_7 = arith.constant dense<0.000000e+00> : vector<4xf32>
    %23 = vector.multi_reduction <add>, %22, %cst_7 [1] : vector<4x128xf32> to vector<4xf32>
    %24 = vector.shape_cast %23 : vector<4xf32> to vector<4x1xf32>
    %cst_8 = arith.constant dense<0.000000e+00> : vector<4xf32>
    %25 = vector.multi_reduction <add>, %21, %cst_8 [1] : vector<4x128xf32> to vector<4xf32>
    %26 = vector.shape_cast %25 : vector<4xf32> to vector<4x1xf32>
    %cst_9 = arith.constant dense<0.000000e+00> : vector<4xf32>
    %27 = vector.multi_reduction <add>, %11, %cst_9 [1] : vector<4x128xf32> to vector<4xf32>
    %28 = vector.shape_cast %27 : vector<4xf32> to vector<4x1xf32>
    %cst_10 = arith.constant 5.000000e-01 : f32
    %29 = vector.broadcast %cst_10 : f32 to vector<4x128xf32>
    %30 = arith.cmpf ogt, %21, %29 : vector<4x128xf32>
    %31 = arith.extui %30 : vector<4x128xi1> to vector<4x128xi32>
    %32 = arith.sitofp %31 : vector<4x128xi32> to vector<4x128xf32>
    %cst_11 = arith.constant dense<0.000000e+00> : vector<4xf32>
    %33 = vector.multi_reduction <add>, %32, %cst_11 [1] : vector<4x128xf32> to vector<4xf32>
    %34 = vector.shape_cast %33 : vector<4xf32> to vector<4x1xf32>
    %cst_12 = arith.constant dense<0.000000e+00> : vector<128xf32>
    %35 = vector.multi_reduction <add>, %22, %cst_12 [0] : vector<4x128xf32> to vector<128xf32>
    %36 = vector.shape_cast %35 : vector<128xf32> to vector<1x128xf32>
    %cst_13 = arith.constant 9.99999997E-7 : f32
    %37 = vector.broadcast %cst_13 : f32 to vector<1x128xf32>
    %38 = arith.addf %36, %37 : vector<1x128xf32>
    %39 = math.log %38 : vector<1x128xf32>
    %40 = vector.broadcast %39 : vector<1x128xf32> to vector<4x128xf32>
    %41 = arith.mulf %11, %40 : vector<4x128xf32>
    %cst_14 = arith.constant dense<0.000000e+00> : vector<4xf32>
    %42 = vector.multi_reduction <add>, %41, %cst_14 [1] : vector<4x128xf32> to vector<4xf32>
    %43 = vector.shape_cast %42 : vector<4xf32> to vector<4x1xf32>
    %cst_15 = arith.constant 1.000000e+00 : f32
    %44 = vector.broadcast %cst_15 : f32 to vector<4x128xf32>
    %45 = arith.subf %44, %21 : vector<4x128xf32>
    %cst_16 = arith.constant 9.99999997E-7 : f32
    %46 = vector.broadcast %cst_16 : f32 to vector<4x128xf32>
    %47 = arith.addf %45, %46 : vector<4x128xf32>
    %48 = math.log %47 : vector<4x128xf32>
    %cst_17 = arith.constant 1.000000e+00 : f32
    %49 = vector.broadcast %cst_17 : f32 to vector<4x128xf32>
    %50 = arith.subf %49, %11 : vector<4x128xf32>
    %51 = arith.mulf %50, %48 : vector<4x128xf32>
    %cst_18 = arith.constant dense<0.000000e+00> : vector<4xf32>
    %52 = vector.multi_reduction <add>, %51, %cst_18 [1] : vector<4x128xf32> to vector<4xf32>
    %53 = vector.shape_cast %52 : vector<4xf32> to vector<4x1xf32>
    %cst_19 = arith.constant 0.000000e+00 : f32
    %54 = vector.broadcast %cst_19 : f32 to vector<4x1xf32>
    %55 = tpu.concatenate %24, %26, %28, %34, %43, %53, %54, %54 in 1 : vector<4x1xf32>, vector<4x1xf32>, vector<4x1xf32>, vector<4x1xf32>, vector<4x1xf32>, vector<4x1xf32>, vector<4x1xf32>, vector<4x1xf32> -> vector<4x8xf32>
    %c0_20 = arith.constant 0 : index
    %c0_21 = arith.constant 0 : index
    %c0_22 = arith.constant 0 : index
    %56 = vector.load %arg5[%c0_20, %c0_21, %c0_22] : memref<1x4x8xf32, #tpu.memory_space<vmem>>, vector<1x4x8xf32>
    %57 = vector.shape_cast %56 : vector<1x4x8xf32> to vector<4x8xf32>
    %58 = arith.addf %57, %55 : vector<4x8xf32>
    %c0_23 = arith.constant 0 : index
    %c0_24 = arith.constant 0 : index
    %c0_25 = arith.constant 0 : index
    %59 = vector.load %arg5[%c0_23, %c0_24, %c0_25] : memref<1x4x8xf32, #tpu.memory_space<vmem>>, vector<1x4x8xf32>
    %60 = vector.shape_cast %59 : vector<1x4x8xf32> to vector<4x8xf32>
    %61 = vector.shape_cast %58 : vector<4x8xf32> to vector<1x4x8xf32>
    tpu.vector_store %arg5[%c0_23, %c0_24, %c0_25], %61 {strides = array<i32>} : memref<1x4x8xf32, #tpu.memory_space<vmem>>, vector<1x4x8xf32>,
    return
  }
  func.func @transform_0(%arg0: i32, %arg1: i32, %arg2: i32) -> (i32, i32, i32) {
    %c1_i32 = arith.constant 1 : i32
    %0 = arith.muli %arg1, %c1_i32 : i32
    %1 = arith.addi %0, %arg2 : i32
    %c0_i32 = arith.constant 0 : i32
    %c0_i32_0 = arith.constant 0 : i32
    return %arg0, %c0_i32, %1 : i32, i32, i32
  }
  func.func @transform_1(%arg0: i32, %arg1: i32, %arg2: i32) -> (i32, i32, i32) {
    %c1_i32 = arith.constant 1 : i32
    %0 = arith.muli %arg1, %c1_i32 : i32
    %1 = arith.addi %0, %arg2 : i32
    %c0_i32 = arith.constant 0 : i32
    %c0_i32_0 = arith.constant 0 : i32
    return %arg0, %c0_i32, %1 : i32, i32, i32
  }
  func.func @transform_2(%arg0: i32, %arg1: i32, %arg2: i32) -> (i32, i32, i32) {
    %c2_i32 = arith.constant 2 : i32
    %0 = arith.muli %arg0, %c2_i32 : i32
    %1 = arith.addi %0, %arg1 : i32
    %c0_i32 = arith.constant 0 : i32
    %c0_i32_0 = arith.constant 0 : i32
    %c0_i32_1 = arith.constant 0 : i32
    return %1, %c0_i32, %c0_i32_0 : i32, i32, i32
  }
}

</mosaic_0001>

<bundles_post_ra>
// kernel: tpu_custom_call.1
= control target key start
LH: loop header
LB: loop body
LE: loop exit
PB: predicated region body
PF: predicated region fallthrough
CT: control target
= control target key end

     0   :  { %s1035_s0 = inlined_call_operand.hbm [shape: f32[2,4,256], index: 0, kind: input, shape index: {}]   ;;  %s1036_s1 = inlined_call_operand.hbm [shape: s32[2,1,256], index: 1, kind: input, shape index: {}]   ;;  %s1037_s2 = inlined_call_operand.hbm [shape: f32[4,4,8], index: 2, kind: output, shape index: {}]  }
   0x1   :  { %1041 = sst [smem:[#allocation14_spill]] %s1035_s0 }
   0x2   :  { %7 = vsyncpa [#allocation3], 0 }
   0x3   :  { %9 = vsyncpa [#allocation3 + $0x1], 0 }
   0x4   :  { %10 = vsyncpa [#allocation6], 0 }
   0x5   :  { %12 = vsyncpa [#allocation6 + $0x1], 0 }
   0x6   :  { %13 = vsyncpa [#allocation4], 0 }
   0x7   :  { %15 = vsyncpa [#allocation4 + $0x1], 0  ;;  %s794_s9 = smov 0   ;;  %s796_s10 = smov 0  }
   0x8   :  { %s798_s11 = smov 0   ;;  %s800_s12 = smov 0  }
   0x9   :  { %s802_s13 = smov 0   ;;  %s804_s14 = smov 0  }
   0xa   :  { %s806_s15 = smov 0   ;;  %s808_s16 = smov 0  }
   0xb   :  { %s810_s17 = smov 0   ;;  %s812_s18 = smov 0  }
   0xc   :  { %s814_s19 = smov 0  }
   0xd LB: > { %1042 = sst [smem:[#allocation11_spill]] %s769_s18  ;;  %s455_s20 = sadd.s32 4294967295, %s773_s19   ;;  %s773_s19 = sphi %s814_s19, %s21_s19   ;;  %s769_s18 = sphi %s812_s18, %s1054_s18   ;;  %s765_s17 = sphi %s810_s17, %s1062_s17   ;;  %s761_s16 = sphi %s808_s16, %s1052_s16   ;;  %s757_s15 = sphi %s806_s15, %s1061_s15   ;;  %s753_s14 = sphi %s804_s14, %s1060_s14   ;;  %s749_s13 = sphi %s802_s13, %s1059_s13   ;;  %s745_s12 = sphi %s800_s12, %s1058_s12   ;;  %s741_s11 = sphi %s798_s11, %s1057_s11   ;;  %s737_s10 = sphi %s796_s10, %s1056_s10   ;;  %s733_s9 = sphi %s794_s9, %s1055_s9  }
   0xe   : > { %s456_s21 = sadd.s32 4294967294, %s773_s19   ;;  %s36_s22 = sadd.s32 1, %s765_s17 }
   0xf   : > { %s40_s23 = sadd.s32 1, %s769_s18  ;;  %p38_p0 = scmp.ge.s32.totalorder %s36_s22, 2 }
  0x10   : > { %s51_s24 = sadd.s32 1, %s753_s14  ;;  %p58_p1 = scmp.ne.s32.totalorder %s753_s14, %s749_s13 }
  0x11   : > { %p59_p2 = scmp.eq.s32.totalorder %s773_s19, 0  ;;  %s1064_s22 = smov (%p38_p0, %s36_s22), 0 }
  0x12   : > { %1043 = sst [smem:[#allocation12_spill]] %s1064_s22  ;;  %s1066_s23 = smov (!%p38_p0, %s40_s23), %s769_s18 }
  0x13   : > { %s47_s25 = ssub.s32 %s765_s17, %s1064_s22  ;;  %p860_p3 = por %p59_p2, %p58_p1 }
  0x14   : > { %p42_p4 = scmp.ge.s32.totalorder %s1066_s23, 2  ;;  %p64_p5 = scmp.ne.s32.totalorder %s749_s13, %s745_s12 }
  0x15   : > { %p65_p6 = scmp.eq.s32.totalorder %s455_s20, 0  ;;  %s457_s27 = sshll.u32 %s769_s18, 1 }
  0x16   : > { %s1068_s23 = smov (%p42_p4, %s1066_s23), 0  ;;  %s875_s29 = sadd.s32 %s765_s17, %s457_s27 }
  0x17   : > { %1045 = sst [smem:[#allocation13_spill]] %s1068_s23  ;;  %p870_p7 = por %p65_p6, %p64_p5 }
  0x18   : > { %s46_s30 = ssub.s32 %s769_s18, %s1068_s23  ;;  %s458_s3 = sshll.u32 %s1068_s23, 1 }
  0x19   : > { %s48_s4 = sor.u32 %s47_s25, %s46_s30  ;;  %s107_s5 = sadd.s32 %s458_s3, %s1064_s22 }
  0x1a   : > { %p49_p8 = scmp.eq.s32.totalorder %s48_s4, 0  ;;  %s108_s6 = ssub.s32 %s875_s29, %s107_s5 }
  0x1b   : > { %p109_p9 = scmp.eq.s32.totalorder %s108_s6, 0  ;;  %s111_s7 = sadd.s32 1, %s741_s11 }
  0x1c   : > { %s884_s8 = scalar_select %p49_p8, %s753_s14, %s51_s24  }
  0x1d   : > { %s887_s12 = scalar_select %p109_p9, %s741_s11, %s111_s7  }
  0x1e   : > { %p121_p10 = scmp.ne.s32.totalorder %s741_s11, %s737_s10  ;;  %p122_p11 = scmp.eq.s32.totalorder %s455_s20, 3 }
  0x1f   : > { %p127_p12 = scmp.ne.s32.totalorder %s737_s10, %s733_s9  ;;  %p128_p13 = scmp.eq.s32.totalorder %s456_s21, 3 }
  0x20   : > { %p897_p0 = por %p122_p11, %p121_p10  ;;  %p494_p2 = scmp.lt.s32.totalorder %s773_s19, 4 }
  0x21   : > { %p901_p1 = por %p128_p13, %p127_p12  ;;  %s907_s24 = sand.u32 1, %s753_s14  }
  0x22   : > { %s463_s30 = sshll.u32 %s875_s29, 6  ;;  %s461_s3 = sshll.u32 %s907_s24, 2 }
  0x23   : > { %s1049_s0 = sld [smem:[#allocation14_spill]]  ;;  %s152_s21 = scalar_lea.vmem [#allocation2], %s461_s3 }
  0x24   : > { %s162_s6 = sshll.u32 %s152_s21, 4  ;;  %p916_p4 = pnand %p494_p2, %p860_p3  ;;  %s163_s6 = int_to_ptr.vmem [resolvable:$true] %s162_s6 }
  0x25   : > { %p466_p5 = scmp.ge.s32.totalorder %s773_s19, 1  ;;  %p187_p6 = scmp.lt.s32.totalorder %s773_s19, 5 }
  0x26   : > { %s149_s23 = scalar_lea.sflag [#allocation3], %s907_s24  ;;  %p595_p8 = pneg %p916_p4 }
  0x27   : > { %s606_s22 = scalar_lea.vmem %s163_s6, 64 }
  0x28   : > { %p607_p9 = scmp.ne.s32.totalorder %s163_s6, %s606_s22 }
  0x29   : > { %s160_s5 = scalar_lea.hbm %s1049_s0, %s463_s30  ;;  %s775_s30 = smov [#allocation2]  }
  0x2a   : > { %p609_p10 = pnand %p607_p9, %p595_p8  ;;  %s611_s26 = sshll.u32 %s775_s30, 4  ;;  %s612_s26 = int_to_ptr.vmem [resolvable:$false] %s611_s26 }
  0x2b   : > { %s613_s3 = scalar_lea.vmem %s612_s26, 128  ;;  %p614_p3 = scmp.lt.s32.totalorder %s163_s6, %s612_s26 }
  0x2c   : > { %p610_p11 = pneg %p609_p10  ;;  %p615_p12 = scmp.lt.s32.totalorder %s613_s3, %s606_s22 }
  0x2e   : > { %p616_p13 = por %p615_p12, %p614_p3 }
  0x30   : > { %p617_p2 = pnand %p616_p13, %p610_p11 }
  0x32   : > { %620 = shalt.err (!%p617_p2)
}
  0x33   : > { %486 = dma.hbm_to_vmem [thread:$0]  (!%p916_p4), %s160_s5, 64, %s163_s6, %s149_s23  }
  0x34   : > { %p934_p9 = pnand %p466_p5, %p187_p6  ;;  %s465_s20 = sshll.u32 %s875_s29, 4 }
  0x35   : > { %s180_s30 = scalar_lea.hbm %s1036_s1, %s465_s20  ;;  %s172_s26 = scalar_lea.vmem [#allocation5], %s907_s24 }
  0x36   : > { %s182_s3 = sshll.u32 %s172_s26, 4  ;;  %s170_s0 = scalar_lea.sflag [#allocation6], %s907_s24  ;;  %s183_s3 = int_to_ptr.vmem [resolvable:$true] %s182_s3 }
  0x37   : > { %s634_s18 = scalar_lea.vmem %s183_s3, 16  ;;  %s776_s23 = smov [#allocation5]  }
  0x38   : > { %p635_p10 = scmp.ne.s32.totalorder %s183_s3, %s634_s18  ;;  %s639_s5 = sshll.u32 %s776_s23, 4  ;;  %s640_s5 = int_to_ptr.vmem [resolvable:$false] %s639_s5 }
  0x39   : > { %s641_s6 = scalar_lea.vmem %s640_s5, 32  ;;  %p642_p5 = scmp.lt.s32.totalorder %s183_s3, %s640_s5 }
  0x3a   : > { %p637_p11 = pnand %p635_p10, %p595_p8  ;;  %p643_p6 = scmp.lt.s32.totalorder %s641_s6, %s634_s18 }
  0x3c   : > { %p638_p3 = pneg %p637_p11  ;;  %p644_p12 = por %p643_p6, %p642_p5 }
  0x3e   : > { %p645_p13 = pnand %p644_p12, %p638_p3 }
  0x40   : > { %648 = shalt.err (!%p645_p13)
}
  0x41   : > { %489 = dma.hbm_to_vmem [thread:$0]  (!%p916_p4), %s180_s30, 16, %s183_s3, %s170_s0  }
  0x42   : > { %191 = sbr.rel (%p934_p9) target bundleno = 328 (0x148), region = 28  ;;  %s193_s29 = sand.u32 (!%p934_p9), 1, %s749_s13  }
  0x43   : > { %s467_s24 = sshll.u32 (!%p934_p9), %s193_s29, 2  ;;  %s194_s20 = scalar_lea.sflag (!%p934_p9), [#allocation3], %s193_s29 }
  0x44   : > { %s197_s22 = scalar_lea.vmem (!%p934_p9), [#allocation2], %s467_s24 }
  0x47   : > { %720 = dma.done.wait (%p870_p7), %s194_s20, 64  }
  0x48   : > { %722 = vsyncadd (%p870_p7), %s194_s20, 4294967232  ;;  %s203_s18 = scalar_lea.sflag [#allocation6], %s193_s29  ;;  %s205_s21 = scalar_lea.vmem [#allocation5], %s193_s29 }
  0x49   : > { %724 = dma.done.wait (%p870_p7), %s203_s18, 16  }
  0x4a   : > { %726 = vsyncadd (%p870_p7), %s203_s18, 4294967280  ;;  %v242_v0 = vlaneseq  ;;  %vm251_vm0 = vcmask 1043456   ;;  %v240_v2 = vld [vmem:[%s197_s22] sm:$0xf]  ;;  %v777_v6 = vmov 0.0   ;;  %s227_s0 = sand.u32 1, %s737_s10  }
  0x4b   : > { %v469_v3 = vld [vmem:[%s205_s21] ss:$0 sm:$0xff]  ;;  %v252_v4 = vsel %vm251_vm0, %v240_v2, -inf  ;;  %s468_s28 = sshll.u32 %s227_s0, 2  ;;  %vm238_vm3 = vcmask 60416   ;;  %vm309_vm4 = vcmask 7168  }
  0x4c   : > { %v243_v1 = vshrl.u32 %v242_v0, 7  ;;  %v253_v5 = vrot.slane %v252_v4, 4  ;;  %s971_s7 = scalar_lea.vmem [#allocation7], %s468_s28  ;;  %vm311_vm5 = vcmask 15360   ;;  %s473_s4 = sshll.u32 %s761_s16, 1  ;;  %vm313_vm6 = vcmask 23552  }
  0x4d   : > { %239 = vst.msk [vmem:[%s971_s7] sm:$0xf] %vm238_vm3, %v777_v6  ;;  %vm315_vm7 = vcmask 31744   ;;  %vm317_vm8 = vcmask 39936   ;;  %s336_s30 = sadd.s32 %s757_s15, %s473_s4  ;;  %vm319_vm9 = vcmask 48128   ;;  %vm321_vm10 = vcmask 56320  }
  0x4e   : > { %vm248_vm1 = vcmp.eq.s32.totalorder %v243_v1, %v469_v3  ;;  %v254_v9 = vmax.f32 %v252_v4, %v253_v5  ;;  %s474_s26 = sshll.u32 %s336_s30, 6  ;;  %s343_s3 = sshll.u32 %s971_s7, 4  ;;  %s344_s3 = int_to_ptr.vmem [resolvable:$true] %s343_s3 }
  0x4f   : > { %v470_v7 = vsel %vm248_vm1, 1.0, %v777_v6  ;;  %s341_s5 = scalar_lea.hbm %s1037_s2, %s474_s26  ;;  %s328_s15 = scalar_lea.sflag [#allocation4], %s227_s0 }
  0x50   : > { %v278_v8 = vsel %vm251_vm0, %v470_v7, 0.0  ;;  %v255_v10 = vrot.slane %v254_v9, 2  ;;  %v304_v40 = vsub.f32 1.0, %v470_v7  ;;  %s649_s6 = scalar_lea.vmem %s344_s3, 64  ;;  %s778_s29 = smov [#allocation7]  }
  0x51   : > { %279 = vadd.xlane.f32.xlu1 %v278_v8  ;;  %p650_p7 = scmp.ne.s32.totalorder %s344_s3, %s649_s6  ;;  %s653_s24 = sshll.u32 %s778_s29, 4  ;;  %s654_s24 = int_to_ptr.vmem [resolvable:$false] %s653_s24 }
  0x52   : > { %v256_v11 = vmax.f32 %v254_v9, %v255_v10  ;;  %s655_s20 = scalar_lea.vmem %s654_s24, 128  ;;  %p656_p2 = scmp.lt.s32.totalorder %s344_s3, %s654_s24 }
  0x53   : > { %p651_p4 = pnand %p650_p7, %p897_p0  ;;  %p657_p9 = scmp.lt.s32.totalorder %s655_s20, %s649_s6 }
  0x54   : > { %v257_v12 = vrot.slane %v256_v11, 1  ;;  %v323_v60 = vld [vmem:[%s971_s7] sm:$0xf] }
  0x55   : > { %p652_p8 = pneg %p651_p4  ;;  %p658_p10 = por %p657_p9, %p656_p2 }
  0x56   : > { %v258_v13 = vmax.f32 %v256_v11, %v257_v12 }
  0x57   : > { %p659_p11 = pnand %p658_p10, %p652_p8 }
  0x58   : > { %v259_v14 = vsub.f32 %v240_v2, %v258_v13 }
  0x5a   : > { %v260_v15 = vmul.f32 1.442695, %v259_v14 }
  0x5c   : > { %585 = vpow2.f32 %v260_v15 }
  0x69   : > { %v586_v16 = vpop.eup %585 }
  0x6a   : > { %v262_v17 = vsel %vm251_vm0, %v586_v16, 0.0 }
  0x6b   : > { %v263_v18 = vrot.slane %v262_v17, 4 }
  0x6d   : > { %v264_v19 = vadd.f32 %v263_v18, %v262_v17 }
  0x6f   : > { %v265_v20 = vrot.slane %v264_v19, 2 }
  0x71   : > { %v266_v21 = vadd.f32 %v265_v20, %v264_v19 }
  0x73   : > { %v267_v22 = vrot.slane %v266_v21, 1 }
  0x75   : > { %v268_v23 = vadd.f32 %v267_v22, %v266_v21 }
  0x77   : > { %587 = vrcp.f32 %v268_v23 }
  0x84   : > { %v588_v24 = vpop.eup %587 }
  0x85   : > { %v270_v25 = vmul.f32 %v588_v24, %v586_v16 }
  0x87   : > { %v275_v26 = vsel %vm251_vm0, %v270_v25, 0.0  ;;  %v271_v27 = vmul.f32 %v470_v7, %v270_v25  ;;  %vm281_vm2 = vcmp.gt.f32.partialorder %v270_v25, 0.5  ;;  %v300_v28 = vsub.f32 1.0, %v270_v25 }
  0x88   : > { %276 = vadd.xlane.f32.xlu0 %v275_v26  ;;  %v471_v29 = vsel %vm281_vm2, 1.0, %v777_v6 }
  0x89   : > { %v272_v30 = vsel %vm251_vm0, %v271_v27, 0.0  ;;  %v284_v31 = vsel %vm251_vm0, %v471_v29, 0.0  ;;  %v301_v32 = vadd.f32 1e-06, %v300_v28 }
  0x8a   : > { %v287_v33 = vrot.slane %v272_v30, 4  ;;  %285 = vadd.xlane.f32.xlu1 %v284_v31 }
  0x8b   : > { %589 = vlog2.f32 %v301_v32 }
  0x8c   : > { %273 = vadd.xlane.f32.xlu0 %v272_v30  ;;  %v288_v34 = vadd.f32 %v287_v33, %v272_v30 }
  0x8e   : > { %v289_v35 = vrot.slane %v288_v34, 2 }
  0x90   : > { %v290_v36 = vadd.f32 %v289_v35, %v288_v34 }
  0x92   : > { %v291_v37 = vrot.slane %v290_v36, 1 }
  0x94   : > { %v292_v38 = vadd.f32 %v291_v37, %v290_v36 }
  0x96   : > { %v293_v39 = vadd.f32 1e-06, %v292_v38 }
  0x98   : > { %v590_v41 = vpop.eup %589  ;;  %591 = vlog2.f32 %v293_v39 }
  0x99   : > { %v303_v42 = vmul.f32 0.6931472, %v590_v41 }
  0x9b   : > { %v305_v43 = vmul.f32 %v304_v40, %v303_v42 }
  0x9d   : > { %v306_v44 = vsel %vm251_vm0, %v305_v43, 0.0 }
  0x9e   : > { %307 = vadd.xlane.f32.xlu1 %v306_v44 }
  0xa5   : > { %v592_v45 = vpop.eup %591 }
  0xa6   : > { %v295_v46 = vmul.f32 0.6931472, %v592_v45 }
  0xa8   : > { %v296_v47 = vmul.f32 %v470_v7, %v295_v46 }
  0xaa   : > { %v297_v48 = vsel %vm251_vm0, %v296_v47, 0.0 }
  0xab   : > { %298 = vadd.xlane.f32.xlu0 %v297_v48 }
  0xda   : > { %v280_v50 = vpop.xlane.xlu1 %279 }
 0x111   : > { %v277_v49 = vpop.xlane.xlu0 %276 }
 0x113   : > { %v286_v53 = vpop.xlane.xlu1 %285 }
 0x115   : > { %v274_v51 = vpop.xlane.xlu0 %273 }
 0x116   : > { %v310_v52 = vsel %vm309_vm4, %v274_v51, %v277_v49 }
 0x117   : > { %v312_v54 = vsel %vm311_vm5, %v310_v52, %v280_v50 }
 0x118   : > { %v314_v56 = vsel %vm313_vm6, %v312_v54, %v286_v53 }
 0x127   : > { %v308_v55 = vpop.xlane.xlu1 %307 }
 0x134   : > { %v299_v57 = vpop.xlane.xlu0 %298 }
 0x135   : > { %v316_v58 = vsel %vm315_vm7, %v314_v56, %v299_v57 }
 0x136   : > { %v318_v59 = vsel %vm317_vm8, %v316_v58, %v308_v55 }
 0x137   : > { %v320_v61 = vsel %vm319_vm9, %v318_v59, 0.0 }
 0x138   : > { %v322_v62 = vsel %vm321_vm10, %v320_v61, 0.0 }
 0x139   : > { %v324_v63 = vadd.f32 %v323_v60, %v322_v62 }
 0x13b   : > { %326 = vst.msk [vmem:[%s971_s7] sm:$0xf] %vm238_vm3, %v324_v63 }
 0x13c   : > { %662 = shalt.err (!%p659_p11)
}
 0x13d   : > { %s663_s22 = scalar_lea.hbm %s341_s5, 64  ;;  %s667_s0 = scalar_lea.hbm %s1037_s2, 256 }
 0x13e   : > { %p664_p3 = scmp.ne.s32.totalorder %s341_s5, %s663_s22  ;;  %p668_p12 = scmp.lt.s32.totalorder %s341_s5, %s1037_s2 }
 0x13f   : > { %p669_p13 = scmp.lt.s32.totalorder %s667_s0, %s663_s22 }
 0x140   : > { %p665_p5 = pnand %p664_p3, %p897_p0 }
 0x141   : > { %p670_p7 = por %p669_p13, %p668_p12 }
 0x142   : > { %p666_p6 = pneg %p665_p5 }
 0x144   : > { %p671_p4 = pnand %p670_p7, %p666_p6 }
 0x146   : > { %674 = shalt.err (!%p671_p4)
}
 0x147   : > { %481 = dma.vmem_to_hbm [thread:$0]  (%p897_p0), %s344_s3, 64, %s341_s5, %s328_s15  }
 0x148 PF: > { %p495_p8 = scmp.ge.s32.totalorder %s773_s19, 2  ;;  %s355_s4 = sand.u32 1, %s733_s9  }
 0x149   : > { %s356_s30 = scalar_lea.sflag [#allocation4], %s355_s4 }
 0x14a   : > { %p491_p2 = pnand %p495_p8, %p901_p1 }
 0x14c   : > { %p492_p9 = pneg %p491_p2 }
 0x14e   : > { %728 = dma.done.wait (%p492_p9), %s356_s30, 64  }
 0x14f   : > { %730 = vsyncadd (%p492_p9), %s356_s30, 4294967232  ;;  %s21_s19 = sadd.s32 1, %s773_s19   ;;  %s1052_s16 = sld [smem:[#allocation11_spill]] }
 0x150   : > { %p18_p10 = scmp.ge.s32.totalorder %s21_s19, 6   ;;  %s1053_s25 = sld [smem:[#allocation12_spill]] }
 0x151   : > { %s1054_s18 = sld [smem:[#allocation13_spill]]  ;;  %s1055_s9 = smov %s737_s10 }
 0x152   : > { %s1056_s10 = smov %s741_s11  ;;  %s1057_s11 = smov %s887_s12 }
 0x153   : > { %s1058_s12 = smov %s749_s13  ;;  %s1059_s13 = smov %s753_s14 }
 0x154   : > { %s1060_s14 = smov %s884_s8  ;;  %s1061_s15 = smov %s765_s17 }
 0x155   :  { %20 = sbr.rel (!%p18_p10) target bundleno = 13 (0xd), region = 90 }
 0x156   : > { %s1062_s17 = smov %s1053_s25 }
 0x15a   :  { %361 = vsyncpa [#allocation3], 1 }
 0x15b   :  { %363 = vsyncpa [#allocation3 + $0x1], 1 }
 0x15c   :  { %364 = vsyncpa [#allocation6], 1 }
 0x15d   :  { %366 = vsyncpa [#allocation6 + $0x1], 1 }
 0x15e   :  { %367 = vsyncpa [#allocation4], 1 }
 0x15f   :  { %369 = vsyncpa [#allocation4 + $0x1], 1 }

</bundles_post_ra>
